<compile_context>
chip_gen: v6e
topology: v6e:2x2x1
jax: 0.10.0
libtpu: 0.0.40
codegen_flags: <defaults>
</compile_context>

<pallas_src>
from functools import partial
import math

import jax
import jax.numpy as jnp
from jax import lax
from jax.experimental import pallas as pl
from jax.experimental.pallas import tpu as pltpu

LANE = 128
MAX_BLOCK_ROWS = 1024  # (1024,128) f32 = 512 KiB/block; x2 inputs x2 buffers = 2 MiB VMEM


def _focal_loss_kernel(x_ref, t_ref, out_ref, acc_ref, *,
                       alpha, gamma, smooth, block_rows, steps_per_chunk, n_valid):
    step = pl.program_id(1)

    @pl.when(step == 0)
    def _():
        acc_ref[...] = jnp.zeros_like(acc_ref)

    x = x_ref[...].astype(jnp.float32)
    t = t_ref[...].astype(jnp.float32)

    # Mask everything past the real element count. This covers sub-row padding
    # (when n % 128 != 0) and boundary blocks whose contents are unspecified,
    # so padding fill values never matter.
    chunk = pl.program_id(0)
    row0 = (chunk * steps_per_chunk + step) * block_rows
    rows_iota = lax.broadcasted_iota(jnp.int32, x.shape, 0)
    cols_iota = lax.broadcasted_iota(jnp.int32, x.shape, 1)
    elem_ids = (row0 + rows_iota) * LANE + cols_iota
    valid = elem_ids < n_valid
    x = jnp.where(valid, x, 0.0)
    t = jnp.where(valid, t, 2.0)  # neither 0 nor 1 -> zero loss contribution

    # One softplus + one sigmoid per element on the EUP; no jnp.power, no raw log.
    ls = jax.nn.log_sigmoid(x)                       # == log(sigmoid(x))
    prob = jnp.clip(jax.nn.sigmoid(x), smooth, 1.0 - smooth)

    pos_mask = (t == 1.0).astype(jnp.float32)
    neg_mask = (t == 0.0).astype(jnp.float32)

    # log(clip(sigmoid(x), s, 1-s)) == clip(log_sigmoid(x), log(s), log(1-s))
    log_p = jnp.clip(ls, math.log(smooth), math.log1p(-smooth))
    # log_sigmoid(-x) == log_sigmoid(x) - x
    log_1mp = ls - x

    if gamma == 2.0:
        om = 1.0 - prob
        pos_w = pos_mask * (om * om)
        neg_w = neg_mask * (prob * prob)
    elif float(gamma).is_integer() and gamma >= 0:
        g = int(gamma)
        pos_w = pos_mask * lax.integer_pow(1.0 - prob, g)
        neg_w = neg_mask * lax.integer_pow(prob, g)
    else:
        pos_w = pos_mask * jnp.power(1.0 - prob, gamma)
        neg_w = neg_mask * jnp.power(prob, gamma)

    loss = -(pos_w * log_p) - alpha * (neg_w * log_1mp)

    # Lane-wise partial accumulation (VPU adds + tiny sublane reduce); the
    # cross-lane reduce happens once, outside the kernel.
    acc_ref[...] += jnp.sum(loss, axis=0, keepdims=True)

    @pl.when(step == pl.num_programs(1) - 1)
    def _():
        out_ref[...] = acc_ref[...]


def binary_focal_loss(output, target, *, alpha=3.0, gamma=2.0, smooth=1e-6,
                      max_block_rows=MAX_BLOCK_ROWS, num_chunks=2):
    """JAX wrapper matching BinaryFocalLoss(alpha=3, gamma=2, ignore_index=None).

    Note: the reference module always applies `.mean()` regardless of the
    `reduction` argument, so we reproduce that.
    """
    n = int(output.size)
    x = output.reshape(-1)          # free reshape; NO dtype cast in the wrapper
    t = target.reshape(-1)

    n128 = pl.cdiv(n, LANE) * LANE
    if n128 != n:
        # TODO(synk): replace this full-array pad with manual-DMA tail handling
        # when the element count is not a multiple of 128 (pad values are
        # irrelevant: the kernel masks by global element index).
        x = jnp.pad(x, (0, n128 - n))
        t = jnp.pad(t, (0, n128 - n))
    rows = n128 // LANE
    x2 = x.reshape(rows, LANE)
    t2 = t.reshape(rows, LANE)

    # Largest lane-dense block that fits comfortably; full-dim block for small n.
    block_rows = rows if rows <= max_block_rows else max_block_rows
    total_steps = pl.cdiv(rows, block_rows)
    # Leading 'parallel' axis for v7x's 2 TensorCores (only when it splits evenly).
    chunks = num_chunks if (total_steps >= 2 and total_steps % num_chunks == 0) else 1
    steps_per_chunk = total_steps // chunks

    kernel = partial(
        _focal_loss_kernel,
        alpha=float(alpha), gamma=float(gamma), smooth=float(smooth),
        block_rows=block_rows, steps_per_chunk=steps_per_chunk, n_valid=n)

    partials = pl.pallas_call(
        kernel,
        out_shape=jax.ShapeDtypeStruct((chunks, LANE), jnp.float32),
        grid_spec=pltpu.PrefetchScalarGridSpec(
            num_scalar_prefetch=0,
            grid=(chunks, steps_per_chunk),
            in_specs=[
                pl.BlockSpec((block_rows, LANE),
                             lambda c, i: (c * steps_per_chunk + i, 0)),
                pl.BlockSpec((block_rows, LANE),
                             lambda c, i: (c * steps_per_chunk + i, 0)),
            ],
            out_specs=pl.BlockSpec((1, LANE), lambda c, i: (c, 0)),
            scratch_shapes=[pltpu.VMEM((1, LANE), jnp.float32)],
        ),
        compiler_params=pltpu.CompilerParams(
            dimension_semantics=("parallel", "arbitrary")),
    )(x2, t2)

    # Tiny final cross-lane reduce + mean in plain JAX.
    return jnp.sum(partials) / jnp.float32(n)


def _reference(output, target, *, alpha=3.0, gamma=2.0, smooth=1e-6):
    """Pure-JAX reference mirroring the PyTorch forward, for a sanity check."""
    prob = jax.nn.sigmoid(output.astype(jnp.float32))
    prob = jnp.clip(prob, smooth, 1.0 - smooth)
    tgt = target.astype(jnp.float32)
    pos_mask = (tgt == 1).astype(jnp.float32)
    neg_mask = (tgt == 0).astype(jnp.float32)
    pos_loss = -(pos_mask * jnp.power(1.0 - prob, gamma)) * jnp.log(prob)
    neg_loss = -alpha * (neg_mask * jnp.power(prob, gamma)) * jax.nn.log_sigmoid(
        -output.astype(jnp.float32))
    return (pos_loss + neg_loss).mean()


if __name__ == "__main__":
    key = jax.random.PRNGKey(0)
    k_out, k_tgt = jax.random.split(key)

    # Small NCHW shapes: batch=2, channels=4, spatial=16x16
    shape = (2, 4, 16, 16)
    output = jax.random.normal(k_out, shape, dtype=jnp.float32)
    target = jax.random.bernoulli(k_tgt, p=0.3, shape=shape).astype(jnp.float32)

    loss = binary_focal_loss(output, target, alpha=3.0, gamma=2.0)
    loss = jax.block_until_ready(loss)

    ref = _reference(output, target)
    assert jnp.allclose(loss, ref, rtol=1e-5, atol=1e-6), (loss, ref)

    print("KERNEL_OK")
</pallas_src>

<mosaic_0001>
module attributes {stable_mosaic.version = 11 : i64} {
  func.func @_focal_loss_kernel(%arg0: i32, %arg1: i32, %arg2: memref<16x128xf32, #tpu.memory_space<vmem>>, %arg3: memref<16x128xf32, #tpu.memory_space<vmem>>, %arg4: memref<1x128xf32, #tpu.memory_space<vmem>>, %arg5: memref<1x128xf32, #tpu.memory_space<vmem>>) attributes {dimension_semantics = [#tpu.dimension_semantics<parallel>, #tpu.dimension_semantics<arbitrary>], iteration_bounds = array<i64: 1, 1>, scalar_prefetch = 0 : i64, scratch_operands = 1 : i64, tpu.core_type = #tpu.core_type<tc>, window_params = [{transform_indices = @transform_0, window_bounds = array<i64: 16, 128>}, {transform_indices = @transform_1, window_bounds = array<i64: 16, 128>}, {transform_indices = @transform_2, window_bounds = array<i64: 1, 128>}]} {
    %c0_i32 = arith.constant 0 : i32
    %0 = arith.cmpi eq, %arg1, %c0_i32 : i32
    %1 = arith.extui %0 : i1 to i32
    %c0_i32_0 = arith.constant 0 : i32
    %2 = arith.cmpi ne, %1, %c0_i32_0 : i32
    scf.if %2 {
      %cst_26 = arith.constant 0.000000e+00 : f32
      %82 = vector.broadcast %cst_26 : f32 to vector<1x128xf32>
      %c0_27 = arith.constant 0 : index
      %c0_28 = arith.constant 0 : index
      %83 = vector.load %arg5[%c0_27, %c0_28] : memref<1x128xf32, #tpu.memory_space<vmem>>, vector<1x128xf32>
      tpu.vector_store %arg5[%c0_27, %c0_28], %82 {strides = array<i32>} : memref<1x128xf32, #tpu.memory_space<vmem>>, vector<1x128xf32>,
    } else {
    }
    %c0 = arith.constant 0 : index
    %c0_1 = arith.constant 0 : index
    %3 = vector.load %arg2[%c0, %c0_1] : memref<16x128xf32, #tpu.memory_space<vmem>>, vector<16x128xf32>
    %c0_2 = arith.constant 0 : index
    %c0_3 = arith.constant 0 : index
    %4 = vector.load %arg3[%c0_2, %c0_3] : memref<16x128xf32, #tpu.memory_space<vmem>>, vector<16x128xf32>
    %c1_i32 = arith.constant 1 : i32
    %5 = arith.muli %arg0, %c1_i32 : i32
    %6 = arith.addi %5, %arg1 : i32
    %c16_i32 = arith.constant 16 : i32
    %7 = arith.muli %6, %c16_i32 : i32
    %8 = tpu.iota {dimensions = array<i32: 0>} : vector<16x128xi32>
    %9 = tpu.iota {dimensions = array<i32: 1>} : vector<16x128xi32>
    %10 = vector.broadcast %7 : i32 to vector<16x128xi32>
    %11 = arith.addi %10, %8 : vector<16x128xi32>
    %c128_i32 = arith.constant 128 : i32
    %12 = vector.broadcast %c128_i32 : i32 to vector<16x128xi32>
    %13 = arith.muli %11, %12 : vector<16x128xi32>
    %14 = arith.addi %13, %9 : vector<16x128xi32>
    %c2048_i32 = arith.constant 2048 : i32
    %15 = vector.broadcast %c2048_i32 : i32 to vector<16x128xi32>
    %16 = arith.cmpi slt, %14, %15 : vector<16x128xi32>
    %cst = arith.constant 0.000000e+00 : f32
    %17 = vector.broadcast %cst : f32 to vector<16x128xf32>
    %18 = arith.select %16, %3, %17 : vector<16x128xi1>, vector<16x128xf32>
    %cst_4 = arith.constant 2.000000e+00 : f32
    %19 = vector.broadcast %cst_4 : f32 to vector<16x128xf32>
    %20 = arith.select %16, %4, %19 : vector<16x128xi1>, vector<16x128xf32>
    %cst_5 = arith.constant 0.000000e+00 : f32
    %21 = vector.broadcast %cst_5 : f32 to vector<16x128xf32>
    %22 = arith.subf %21, %18 : vector<16x128xf32>
    %cst_6 = arith.constant 0.000000e+00 : f32
    %23 = vector.broadcast %cst_6 : f32 to vector<16x128xf32>
    %24 = arith.maximumf %22, %23 : vector<16x128xf32>
    %25 = vector.broadcast %cst_6 : f32 to vector<16x128xf32>
    %26 = arith.subf %22, %25 : vector<16x128xf32>
    %27 = arith.cmpf one, %26, %26 : vector<16x128xf32>
    %28 = vector.broadcast %cst_6 : f32 to vector<16x128xf32>
    %29 = arith.addf %22, %28 : vector<16x128xf32>
    %30 = math.absf %26 : vector<16x128xf32>
    %cst_7 = arith.constant 0.000000e+00 : f32
    %31 = vector.broadcast %cst_7 : f32 to vector<16x128xf32>
    %32 = arith.subf %31, %30 : vector<16x128xf32>
    %33 = math.exp %32 : vector<16x128xf32>
    %34 = math.log1p %33 : vector<16x128xf32>
    %35 = arith.addf %24, %34 : vector<16x128xf32>
    %36 = arith.select %27, %29, %35 : vector<16x128xi1>, vector<16x128xf32>
    %cst_8 = arith.constant 0.000000e+00 : f32
    %37 = vector.broadcast %cst_8 : f32 to vector<16x128xf32>
    %38 = arith.subf %37, %36 : vector<16x128xf32>
    %39 = arith.negf %18 : vector<16x128xf32>
    %40 = math.exp %39 : vector<16x128xf32>
    %cst_9 = arith.constant 1.000000e+00 : f32
    %41 = vector.broadcast %cst_9 : f32 to vector<16x128xf32>
    %42 = arith.addf %41, %40 : vector<16x128xf32>
    %43 = arith.divf %41, %42 : vector<16x128xf32>
    %cst_10 = arith.constant 9.99999997E-7 : f32
    %cst_11 = arith.constant 0.999998986 : f32
    %44 = vector.broadcast %cst_10 : f32 to vector<16x128xf32>
    %45 = arith.maximumf %44, %43 : vector<16x128xf32>
    %46 = vector.broadcast %cst_11 : f32 to vector<16x128xf32>
    %47 = arith.minimumf %46, %45 : vector<16x128xf32>
    %cst_12 = arith.constant 1.000000e+00 : f32
    %48 = vector.broadcast %cst_12 : f32 to vector<16x128xf32>
    %49 = arith.cmpf oeq, %20, %48 : vector<16x128xf32>
    %50 = arith.extui %49 : vector<16x128xi1> to vector<16x128xi32>
    %51 = arith.sitofp %50 : vector<16x128xi32> to vector<16x128xf32>
    %cst_13 = arith.constant 0.000000e+00 : f32
    %52 = vector.broadcast %cst_13 : f32 to vector<16x128xf32>
    %53 = arith.cmpf oeq, %20, %52 : vector<16x128xf32>
    %54 = arith.extui %53 : vector<16x128xi1> to vector<16x128xi32>
    %55 = arith.sitofp %54 : vector<16x128xi32> to vector<16x128xf32>
    %cst_14 = arith.constant -13.8155107 : f32
    %cst_15 = arith.constant -1.00000045E-6 : f32
    %56 = vector.broadcast %cst_14 : f32 to vector<16x128xf32>
    %57 = arith.maximumf %56, %38 : vector<16x128xf32>
    %58 = vector.broadcast %cst_15 : f32 to vector<16x128xf32>
    %59 = arith.minimumf %58, %57 : vector<16x128xf32>
    %60 = arith.subf %38, %18 : vector<16x128xf32>
    %cst_16 = arith.constant 1.000000e+00 : f32
    %61 = vector.broadcast %cst_16 : f32 to vector<16x128xf32>
    %62 = arith.subf %61, %47 : vector<16x128xf32>
    %63 = arith.mulf %62, %62 : vector<16x128xf32>
    %64 = arith.mulf %51, %63 : vector<16x128xf32>
    %65 = arith.mulf %47, %47 : vector<16x128xf32>
    %66 = arith.mulf %55, %65 : vector<16x128xf32>
    %67 = arith.mulf %64, %59 : vector<16x128xf32>
    %cst_17 = arith.constant 0.000000e+00 : f32
    %68 = vector.broadcast %cst_17 : f32 to vector<16x128xf32>
    %69 = arith.subf %68, %67 : vector<16x128xf32>
    %70 = arith.mulf %66, %60 : vector<16x128xf32>
    %cst_18 = arith.constant 3.000000e+00 : f32
    %71 = vector.broadcast %cst_18 : f32 to vector<16x128xf32>
    %72 = arith.mulf %71, %70 : vector<16x128xf32>
    %73 = arith.subf %69, %72 : vector<16x128xf32>
    %c0_19 = arith.constant 0 : index
    %c0_20 = arith.constant 0 : index
    %74 = vector.load %arg5[%c0_19, %c0_20] : memref<1x128xf32, #tpu.memory_space<vmem>>, vector<1x128xf32>
    %cst_21 = arith.constant dense<0.000000e+00> : vector<128xf32>
    %75 = vector.multi_reduction <add>, %73, %cst_21 [0] : vector<16x128xf32> to vector<128xf32>
    %76 = vector.shape_cast %75 : vector<128xf32> to vector<1x128xf32>
    %77 = arith.addf %74, %76 : vector<1x128xf32>
    %c0_22 = arith.constant 0 : index
    %c0_23 = arith.constant 0 : index
    %78 = vector.load %arg5[%c0_22, %c0_23] : memref<1x128xf32, #tpu.memory_space<vmem>>, vector<1x128xf32>
    tpu.vector_store %arg5[%c0_22, %c0_23], %77 {strides = array<i32>} : memref<1x128xf32, #tpu.memory_space<vmem>>, vector<1x128xf32>,
    %c0_i32_24 = arith.constant 0 : i32
    %79 = arith.cmpi eq, %arg1, %c0_i32_24 : i32
    %80 = arith.extui %79 : i1 to i32
    %c0_i32_25 = arith.constant 0 : i32
    %81 = arith.cmpi ne, %80, %c0_i32_25 : i32
    scf.if %81 {
      %c0_26 = arith.constant 0 : index
      %c0_27 = arith.constant 0 : index
      %82 = vector.load %arg5[%c0_26, %c0_27] : memref<1x128xf32, #tpu.memory_space<vmem>>, vector<1x128xf32>
      %c0_28 = arith.constant 0 : index
      %c0_29 = arith.constant 0 : index
      %83 = vector.load %arg4[%c0_28, %c0_29] : memref<1x128xf32, #tpu.memory_space<vmem>>, vector<1x128xf32>
      tpu.vector_store %arg4[%c0_28, %c0_29], %82 {strides = array<i32>} : memref<1x128xf32, #tpu.memory_space<vmem>>, vector<1x128xf32>,
    } else {
    }
    return
  }
  func.func @transform_0(%arg0: i32, %arg1: i32) -> (i32, i32) {
    %c1_i32 = arith.constant 1 : i32
    %0 = arith.muli %arg0, %c1_i32 : i32
    %1 = arith.addi %0, %arg1 : i32
    %c0_i32 = arith.constant 0 : i32
    %c0_i32_0 = arith.constant 0 : i32
    return %1, %c0_i32 : i32, i32
  }
  func.func @transform_1(%arg0: i32, %arg1: i32) -> (i32, i32) {
    %c1_i32 = arith.constant 1 : i32
    %0 = arith.muli %arg0, %c1_i32 : i32
    %1 = arith.addi %0, %arg1 : i32
    %c0_i32 = arith.constant 0 : i32
    %c0_i32_0 = arith.constant 0 : i32
    return %1, %c0_i32 : i32, i32
  }
  func.func @transform_2(%arg0: i32, %arg1: i32) -> (i32, i32) {
    %c0_i32 = arith.constant 0 : i32
    %c0_i32_0 = arith.constant 0 : i32
    return %arg0, %c0_i32 : i32, i32
  }
}

</mosaic_0001>

<bundles_post_ra>
// kernel: tpu_custom_call.1
= control target key start
LH: loop header
LB: loop body
LE: loop exit
PB: predicated region body
PF: predicated region fallthrough
CT: control target
= control target key end

     0   :  { %7 = vsyncpa [#allocation4], 0  ;;  %s373_s0 = inlined_call_operand.hbm [shape: f32[16,128], index: 0, kind: input, shape index: {}]   ;;  %s374_s1 = inlined_call_operand.hbm [shape: f32[16,128], index: 1, kind: input, shape index: {}]   ;;  %s375_s2 = inlined_call_operand.hbm [shape: f32[1,128], index: 2, kind: output, shape index: {}]  }
   0x1   :  { %8 = vsyncpa [#allocation7], 0 }
   0x2   :  { %9 = vsyncpa [#allocation5], 0  ;;  %s300_s9 = smov [#allocation3]  }
   0x3   :  { %s19_s10 = sshll.u32 %s300_s9, 4  ;;  %s20_s10 = int_to_ptr.vmem [resolvable:$true] %s19_s10 }
   0x4   :  { %s242_s11 = scalar_lea.vmem %s20_s10, 256  ;;  %p247_p1 = scmp.lt.s32.totalorder %s20_s10, %s20_s10 }
   0x5   :  { %p243_p0 = scmp.ne.s32.totalorder %s20_s10, %s242_s11  ;;  %p248_p2 = scmp.lt.s32.totalorder %s242_s11, %s242_s11 }
   0x7   :  { %p249_p3 = por %p248_p2, %p247_p1 }
   0x9   :  { %p250_p4 = pnand %p249_p3, %p243_p0 }
   0xb   :  { %253 = shalt.err (!%p250_p4)
}
   0xc   :  { %s301_s12 = smov 128   ;;  %s302_s13 = smov 8  }
   0xd   :  { %25 = dma.hbm_to_vmem [thread:$0]  %s373_s0, 256, %s20_s10, [#allocation4], %s301_s12, %s301_s12, %s302_s13  }
   0xe   :  { %s303_s16 = smov [#allocation6]  }
   0xf   :  { %s35_s17 = sshll.u32 %s303_s16, 4  ;;  %s36_s17 = int_to_ptr.vmem [resolvable:$true] %s35_s17 }
  0x10   :  { %s262_s18 = scalar_lea.vmem %s36_s17, 256  ;;  %p267_p6 = scmp.lt.s32.totalorder %s36_s17, %s36_s17 }
  0x11   :  { %p263_p5 = scmp.ne.s32.totalorder %s36_s17, %s262_s18  ;;  %p268_p7 = scmp.lt.s32.totalorder %s262_s18, %s262_s18 }
  0x13   :  { %p269_p8 = por %p268_p7, %p267_p6 }
  0x15   :  { %p270_p9 = pnand %p269_p8, %p263_p5 }
  0x17   :  { %273 = shalt.err (!%p270_p9)
}
  0x18   :  { %41 = dma.hbm_to_vmem [thread:$0]  %s374_s1, 256, %s36_s17, [#allocation7], %s301_s12, %s301_s12, %s302_s13  }
  0x19   :  { %294 = dma.done.wait [#allocation4], 256  }
  0x1a   :  { %295 = vsyncadd [#allocation4], 4294967040 }
  0x1b   :  { %296 = dma.done.wait [#allocation7], 256  }
  0x1c   :  { %297 = vsyncadd [#allocation7], 4294967040  ;;  %v63_v0 = vlaneseq  ;;  %v304_v1 = vmov 0.0   ;;  %v57_v8 = vld [vmem:[#allocation3] sm:$0xff]  ;;  %v58_v9 = vld [vmem:[#allocation3 + $0x8] sm:$0xff]  ;;  %s305_s0 = smov [#allocation8]  }
  0x1d   :  { %56 = vst [vmem:[#allocation2] sm:$0x1] %v304_v1  ;;  %v59_v33 = vld [vmem:[#allocation6] sm:$0xff]  ;;  %v60_v36 = vld [vmem:[#allocation6 + $0x8] sm:$0xff]  ;;  %s196_s1 = sshll.u32 %s305_s0, 4  ;;  %s197_s1 = int_to_ptr.vmem [resolvable:$true] %s196_s1 }
  0x1e   :  { %v64_v2 = vshrl.u32 %v63_v0, 7  ;;  %v67_v3 = vand.u32 127, %v63_v0  ;;  %s274_s21 = scalar_lea.vmem %s197_s1, 16  ;;  %s278_s22 = scalar_lea.vmem %s197_s1, 32 }
  0x1f   :  { %p275_p10 = scmp.ne.s32.totalorder %s197_s1, %s274_s21  ;;  %p279_p11 = scmp.lt.s32.totalorder %s197_s1, %s197_s1 }
  0x20   :  { %v65_v4 = vadd.s32 8, %v64_v2  ;;  %v71_v5 = vmul.u32 128, %v64_v2  ;;  %p280_p12 = scmp.lt.s32.totalorder %s278_s22, %s274_s21 }
  0x22   :  { %v72_v6 = vmul.u32 128, %v65_v4  ;;  %v73_v7 = vadd.s32 %v71_v5, %v67_v3  ;;  %p281_p13 = por %p280_p12, %p279_p11 }
  0x24   :  { %v74_v10 = vadd.s32 %v72_v6, %v67_v3  ;;  %vm75_vm0 = vcmp.lt.s32.totalorder %v73_v7, 2048  ;;  %p282_p0 = pnand %p281_p13, %p275_p10 }
  0x25   :  { %v329_v11 = vsel %vm75_vm0, %v57_v8, 0.0  ;;  %v79_v40 = vsel %vm75_vm0, %v59_v33, 2.0 }
  0x26   :  { %vm76_vm1 = vcmp.lt.s32.totalorder %v74_v10, 2048  ;;  %v332_v12 = vsub.f32 0.0, %v329_v11  ;;  %v206_v13 = vmul.f32 -1.442695, %v329_v11  ;;  %vm137_vm3 = vcmp.eq.f32.partialorder %v79_v40, 1.0 }
  0x27   :  { %v336_v14 = vsel %vm76_vm1, %v58_v9, 0.0  ;;  %v80_v45 = vsel %vm76_vm1, %v60_v36, 2.0  ;;  %vm143_vm4 = vcmp.eq.f32.partialorder %v79_v40, 0.0  ;;  %v208_v0 = vsel %vm137_vm3, 1.0, %v304_v1 }
  0x28   :  { %v339_v15 = vsub.f32 0.0, %v336_v14  ;;  %v89_v16 = vand.u32 2147483647, %v332_v12  ;;  %218 = vpow2.f32 %v206_v13  ;;  %v207_v17 = vmul.f32 -1.442695, %v336_v14 }
  0x29   :  { %v83_v48 = vmax.f32 %v332_v12, 0.0  ;;  %vm85_vm5 = vcmp.ne.f32.partialorder %v332_v12, %v332_v12  ;;  %vm144_vm7 = vcmp.eq.f32.partialorder %v80_v45, 0.0  ;;  %vm138_vm8 = vcmp.eq.f32.partialorder %v80_v45, 1.0 }
  0x2a   :  { %v90_v18 = vand.u32 2147483647, %v339_v15  ;;  %v91_v19 = vsub.f32 0.0, %v89_v16  ;;  %220 = vpow2.f32 %v207_v17  ;;  %v84_v55 = vmax.f32 %v339_v15, 0.0 }
  0x2b   :  { %v210_v61 = vsel %vm143_vm4, 1.0, %v304_v1  ;;  %vm86_vm9 = vcmp.ne.f32.partialorder %v339_v15, %v339_v15  ;;  %v211_v5 = vsel %vm144_vm7, 1.0, %v304_v1  ;;  %v209_v8 = vsel %vm138_vm8, 1.0, %v304_v1 }
  0x2c   :  { %v92_v20 = vsub.f32 0.0, %v90_v18  ;;  %v93_v21 = vmul.f32 1.442695, %v91_v19 }
  0x2e   :  { %222 = vpow2.f32 %v93_v21  ;;  %v95_v22 = vmul.f32 1.442695, %v92_v20 }
  0x30   :  { %224 = vpow2.f32 %v95_v22 }
  0x35   :  { %v219_v23 = vpop.eup %218 }
  0x36   :  { %v127_v24 = vadd.f32 1.0, %v219_v23 }
  0x37   :  { %v221_v25 = vpop.eup %220 }
  0x38   :  { %v128_v26 = vadd.f32 1.0, %v221_v25  ;;  %226 = vrcp.f32 %v127_v24 }
  0x3a   :  { %228 = vrcp.f32 %v128_v26 }
  0x3b   :  { %v223_v27 = vpop.eup %222 }
  0x3c   :  { %v97_v28 = vadd.f32 1.0, %v223_v27  ;;  %v100_v31 = vmul.f32 -0.5, %v223_v27  ;;  %v103_v37 = vand.u32 2147483647, %v223_v27 }
  0x3d   :  { %v225_v29 = vpop.eup %224 }
  0x3e   :  { %230 = vlog2.f32 %v97_v28  ;;  %v106_v30 = vadd.f32 1.0, %v225_v29  ;;  %v109_v32 = vmul.f32 -0.5, %v225_v29  ;;  %v101_v35 = vadd.f32 1.0, %v100_v31 }
  0x3f   :  { %v112_v42 = vand.u32 2147483647, %v225_v29  ;;  %vm347_vm2 = vcmp.lt.f32.partialorder %v103_v37, 0.0004427343  ;;  %v175_v37 = vld [vmem:[#allocation2] sm:$0x1] }
  0x40   :  { %232 = vlog2.f32 %v106_v30  ;;  %v110_v41 = vadd.f32 1.0, %v109_v32  ;;  %v102_v46 = vmul.f32 %v223_v27, %v101_v35 }
  0x41   :  { %vm113_vm6 = vcmp.lt.f32.partialorder %v112_v42, 0.0004427343 }
  0x42   :  { %v111_v53 = vmul.f32 %v225_v29, %v110_v41 }
  0x45   :  { %v227_v34 = vpop.eup %226 }
  0x46   :  { %v133_v38 = vmax.f32 %v227_v34, 1e-06 }
  0x47   :  { %v229_v39 = vpop.eup %228 }
  0x48   :  { %v134_v43 = vmax.f32 %v229_v39, 1e-06  ;;  %v135_v44 = vmin.f32 %v133_v38, 0.999999 }
  0x4a   :  { %v136_v50 = vmin.f32 %v134_v43, 0.999999  ;;  %v155_v51 = vsub.f32 1.0, %v135_v44  ;;  %v161_v59 = vmul.f32 %v135_v44, %v135_v44 }
  0x4b   :  { %v231_v47 = vpop.eup %230 }
  0x4c   :  { %v99_v52 = vmul.f32 0.6931472, %v231_v47  ;;  %v156_v56 = vsub.f32 1.0, %v136_v50  ;;  %v157_v62 = vmul.f32 %v155_v51, %v155_v51  ;;  %v162_v2 = vmul.f32 %v136_v50, %v136_v50 }
  0x4d   :  { %v233_v54 = vpop.eup %232  ;;  %v163_v9 = vmul.f32 %v210_v61, %v161_v59 }
  0x4e   :  { %v105_v57 = vsel %vm347_vm2, %v102_v46, %v99_v52  ;;  %v108_v58 = vmul.f32 0.6931472, %v233_v54  ;;  %v158_v6 = vmul.f32 %v156_v56, %v156_v56  ;;  %v159_v13 = vmul.f32 %v208_v0, %v157_v62 }
  0x4f   :  { %v115_v60 = vadd.f32 %v105_v57, %v83_v48  ;;  %v164_v19 = vmul.f32 %v211_v5, %v162_v2 }
  0x50   :  { %v114_v63 = vsel %vm113_vm6, %v111_v53, %v108_v58  ;;  %v160_v20 = vmul.f32 %v209_v8, %v158_v6 }
  0x51   :  { %v116_v3 = vadd.f32 %v114_v63, %v84_v55  ;;  %v117_v4 = vsel %vm85_vm5, %v332_v12, %v115_v60 }
  0x52   :  { %v119_v7 = vsub.f32 0.0, %v117_v4 }
  0x53   :  { %v118_v10 = vsel %vm86_vm9, %v339_v15, %v116_v3 }
  0x54   :  { %v120_v16 = vsub.f32 0.0, %v118_v10  ;;  %v149_v17 = vmax.f32 %v119_v7, -13.815511  ;;  %v153_v18 = vsub.f32 %v119_v7, %v329_v11 }
  0x56   :  { %v150_v21 = vmax.f32 %v120_v16, -13.815511  ;;  %v151_v22 = vmin.f32 %v149_v17, -1.0000005e-06  ;;  %v154_v12 = vsub.f32 %v120_v16, %v336_v14  ;;  %v169_v23 = vmul.f32 %v163_v9, %v153_v18 }
  0x58   :  { %v152_v24 = vmin.f32 %v150_v21, -1.0000005e-06  ;;  %v165_v25 = vmul.f32 %v159_v13, %v151_v22  ;;  %v170_v26 = vmul.f32 %v164_v19, %v154_v12  ;;  %v171_v27 = vmul.f32 3.0, %v169_v23 }
  0x5a   :  { %v166_v1 = vmul.f32 %v160_v20, %v152_v24  ;;  %v167_v28 = vsub.f32 0.0, %v165_v25  ;;  %v172_v29 = vmul.f32 3.0, %v170_v26 }
  0x5c   :  { %v168_v15 = vsub.f32 0.0, %v166_v1  ;;  %v173_v30 = vsub.f32 %v167_v28, %v171_v27 }
  0x5e   :  { %v174_v31 = vsub.f32 %v168_v15, %v172_v29 }
  0x60   :  { %v176_v32 = vadd.f32 %v174_v31, %v173_v30 }
  0x62   :  { %v177_v33 = vrot.slane %v176_v32, 4 }
  0x64   :  { %v178_v11 = vadd.f32 %v177_v33, %v176_v32 }
  0x66   :  { %v179_v34 = vrot.slane %v178_v11, 2 }
  0x68   :  { %v180_v35 = vadd.f32 %v179_v34, %v178_v11 }
  0x6a   :  { %v181_v36 = vrot.slane %v180_v35, 1 }
  0x6c   :  { %v182_v38 = vadd.f32 %v181_v36, %v180_v35 }
  0x6e   :  { %v183_v14 = vadd.f32 %v182_v38, %v175_v37 }
  0x70   :  { %184 = vst [vmem:[#allocation2] sm:$0x1] %v183_v14 }
  0x77   :  { %v188_v39 = vld [vmem:[#allocation2] sm:$0x1] }
  0x78   :  { %189 = vst [vmem:[#allocation8] sm:$0x1] %v188_v39 }
  0x79   :  { %285 = shalt.err (!%p282_p0)
}
  0x7a   :  { %199 = dma.vmem_to_hbm [thread:$0]  %s197_s1, 16, %s375_s2, [#allocation5]  }
  0x7b   :  { %298 = dma.done.wait [#allocation5], 16  }
  0x7c   :  { %299 = vsyncadd [#allocation5], 4294967280 }
  0x7d   :  { %203 = vsyncpa [#allocation4], 1 }
  0x7e   :  { %204 = vsyncpa [#allocation7], 1 }
  0x7f   :  { %205 = vsyncpa [#allocation5], 1 }

</bundles_post_ra>
